<compile_context>
chip_gen: v7x
topology: tpu7x:2x2x1
jax: 0.10.0
libtpu: 0.0.40
codegen_flags: <defaults>
</compile_context>

<pallas_src>
import jax
import jax.numpy as jnp
from jax.experimental import pallas as pl
from jax.experimental.pallas import tpu as pltpu


def _round_up(n, m):
    return ((n + m - 1) // m) * m


def _block_diag(w, s):
    """Block-diagonal stack of `s` copies of a 2-D (out, in) matrix."""
    if s == 1:
        return w
    o, i = w.shape
    out = jnp.zeros((s * o, s * i), w.dtype)
    for k in range(s):
        out = out.at[k * o:(k + 1) * o, k * i:(k + 1) * i].set(w)
    return out


def _default_stack():
    """MXU-fill stack factor: 4 for 256x256 MXUs (v6e/v7x), 2 for 128x128 (v5e and older)."""
    try:
        kind = jax.devices()[0].device_kind.lower()
    except Exception:
        return 4
    for old in ("v2", "v3", "v4", "v5"):
        if old in kind:
            return 2
    return 4


def hydra_reg_kernel(x_ref, w1_ref, b1_ref, w2_ref, b2_ref, w3_ref, b3_ref, o_ref):
    """Fused MLP forward on one tile of S*ncol batch elements.

    x_ref : (1, S, in_dim, ncol)    S batch sub-chunks on sublanes, batch on lanes
    w1_ref: (hidden, in_dim) f32    b1_ref: (hidden, 1) f32
    w2_ref: (S*hidden, S*hidden)    block-diag, bf16 (f32 in the parity path)
    b2_ref: (S*hidden, 1) f32
    w3_ref: (S*out_pad, S*hidden)   block-diag, bf16 (f32 in the parity path)
    b3_ref: (S*out_pad, 1) f32
    o_ref : (1, S*out_pad, ncol)
    """
    x = x_ref[0]                                   # (S, in_dim, ncol)
    s_stack, in_dim, _ = x.shape
    w1 = w1_ref[...]
    b1 = b1_ref[...]
    mxu_dtype = w2_ref.dtype

    # ---- Layer 1: Linear(in_dim -> hidden) + ReLU, per batch sub-chunk --------------
    # in_dim == 1 is a K==1 contraction -> VPU broadcast FMA (keeps the MXU free).
    chunks = []
    for s in range(s_stack):                       # static unroll (S is 1, 2 or 4)
        xs = x[s]                                  # (in_dim, ncol)
        if in_dim == 1:
            hs = w1 * xs + b1
        else:
            hs = jnp.dot(w1.astype(mxu_dtype), xs.astype(mxu_dtype),
                         preferred_element_type=jnp.float32) + b1
        chunks.append(jnp.maximum(hs, 0.0))
    h = jnp.concatenate(chunks, axis=0)            # (S*hidden, ncol) f32

    # ---- Layer 2: block-diag Linear(hidden -> hidden) + ReLU (MXU, K=M=S*64) --------
    h = jnp.dot(w2_ref[...], h.astype(mxu_dtype),
                preferred_element_type=jnp.float32) + b2_ref[...]
    h = jnp.maximum(h, 0.0)

    # ---- Layer 3: block-diag quantile heads Linear(hidden -> out_pad) (MXU) ---------
    y = jnp.dot(w3_ref[...], h.astype(mxu_dtype),
                preferred_element_type=jnp.float32) + b3_ref[...]
    o_ref[0] = y.astype(o_ref.dtype)


def hydra_reg_forward(x, params, *, tile_b=8192, stack=None, use_bf16=True):
    """x: (B, input_dim) f32; params: PyTorch-layout weights (out, in) / biases (out,).

    Returns (B, output_dim) f32 (PyTorch layout).  The final un-stack/transpose is a
    wrapper-side XLA op; consumers that accept the feature-major layout should fuse it.
    """
    B, in_dim = x.shape
    w1, b1 = params["w1"], params["b1"]
    w2, b2 = params["w2"], params["b2"]
    w3, b3 = params["w3"], params["b3"]
    hidden = w1.shape[0]
    out_dim = w3.shape[0]
    out_pad = _round_up(out_dim, 8)                # sublane-aligned head rows

    S = _default_stack() if stack is None else stack
    mxu_dtype = jnp.bfloat16 if use_bf16 else x.dtype

    # --- Tile geometry: ncol lanes per sub-chunk, S sub-chunks per grid step ---------
    ncol_cap = max(128, _round_up(tile_b, S * 128) // S)          # requested tile
    ncol_two = max(128, _round_up(-(-B // (2 * S)), 128))         # aim for >= 2 steps
    ncol = min(ncol_cap, ncol_two)
    tile = S * ncol
    B_pad = _round_up(B, tile)
    G = B_pad // tile

    # --- Input as (G, S, in_dim, ncol): for in_dim == 1, a cheap 1-D pad + reshapes --
    if in_dim == 1:
        xf = jnp.pad(x.reshape(B), (0, B_pad - B))
        xs = xf.reshape(G, S, 1, ncol)
    else:
        # TODO(synk): for in_dim > 1 this transpose is a real HBM copy (perf only).
        xp = jnp.pad(x, ((0, B_pad - B), (0, 0)))
        xs = xp.reshape(G, S, ncol, in_dim).transpose(0, 1, 3, 2)

    # --- Weights: S-way block-diagonal stacks; MXU operands pre-cast to bf16 ---------
    w1c = w1.astype(jnp.float32)
    b1c = b1.reshape(hidden, 1).astype(jnp.float32)
    w2bd = _block_diag(w2, S).astype(mxu_dtype)
    b2s = jnp.tile(b2.reshape(hidden, 1), (S, 1)).astype(jnp.float32)
    w3p = jnp.pad(w3, ((0, out_pad - out_dim), (0, 0)))
    b3p = jnp.pad(b3.reshape(out_dim, 1), ((0, out_pad - out_dim), (0, 0)))
    w3bd = _block_diag(w3p, S).astype(mxu_dtype)
    b3s = jnp.tile(b3p, (S, 1)).astype(jnp.float32)

    # Constant block index -> Pallas keeps these blocks resident across the grid.
    resident = lambda shape: pl.BlockSpec(shape, lambda i: (0, 0))

    flops = 2 * B_pad * hidden * (in_dim + S * hidden + S * out_pad)
    bytes_accessed = (4 * B_pad * (in_dim + out_pad)
                      + (w2bd.size + w3bd.size) * w2bd.dtype.itemsize
                      + 4 * (hidden * in_dim + hidden + S * hidden + S * out_pad))

    out = pl.pallas_call(
        hydra_reg_kernel,
        out_shape=jax.ShapeDtypeStruct((G, S * out_pad, ncol), x.dtype),
        grid_spec=pltpu.PrefetchScalarGridSpec(
            num_scalar_prefetch=0,
            grid=(G,),
            in_specs=[
                pl.BlockSpec((1, S, in_dim, ncol), lambda i: (i, 0, 0, 0)),  # x tile
                resident((hidden, in_dim)),                                  # w1
                resident((hidden, 1)),                                       # b1
                resident((S * hidden, S * hidden)),                          # w2 block-diag
                resident((S * hidden, 1)),                                   # b2 stacked
                resident((S * out_pad, S * hidden)),                         # w3 block-diag
                resident((S * out_pad, 1)),                                  # b3 stacked
            ],
            out_specs=pl.BlockSpec((1, S * out_pad, ncol), lambda i: (i, 0, 0)),
        ),
        compiler_params=pltpu.CompilerParams(
            dimension_semantics=("parallel",),
            vmem_limit_bytes=32 * 1024 * 1024,
        ),
        cost_estimate=pl.CostEstimate(
            flops=flops, transcendentals=0, bytes_accessed=bytes_accessed),
    )(xs, w1c, b1c, w2bd, b2s, w3bd, b3s)

    # (G, S*out_pad, ncol) -> (B, out_dim): un-stack sub-chunks, then batch-major slice.
    out = out.reshape(G, S, out_pad, ncol).transpose(0, 1, 3, 2)
    return out.reshape(B_pad, out_pad)[:B, :out_dim]


def init_params(key, input_dim=1, hidden_dim=64, output_dim=3):
    """PyTorch-style init: weight (out, in), bias (out,), U(-1/sqrt(fan_in), 1/sqrt(fan_in))."""
    ks = jax.random.split(key, 6)

    def lin(kw, kb, fan_in, fan_out):
        bound = 1.0 / jnp.sqrt(jnp.float32(fan_in))
        w = jax.random.uniform(kw, (fan_out, fan_in), jnp.float32, -bound, bound)
        b = jax.random.uniform(kb, (fan_out,), jnp.float32, -bound, bound)
        return w, b

    w1, b1 = lin(ks[0], ks[1], input_dim, hidden_dim)
    w2, b2 = lin(ks[2], ks[3], hidden_dim, hidden_dim)
    w3, b3 = lin(ks[4], ks[5], hidden_dim, output_dim)
    return {"w1": w1, "b1": b1, "w2": w2, "b2": b2, "w3": w3, "b3": b3}


def reference_forward(x, p):
    h = jnp.maximum(x @ p["w1"].T + p["b1"], 0.0)
    h = jnp.maximum(h @ p["w2"].T + p["b2"], 0.0)
    return h @ p["w3"].T + p["b3"]


if __name__ == "__main__":
    key = jax.random.PRNGKey(0)
    kx, kp = jax.random.split(key)

    input_dim, hidden_dim, output_dim = 1, 64, 3
    batch = 16  # small, not tile-aligned: exercises the padded single-step path

    x = jax.random.normal(kx, (batch, input_dim), jnp.float32)
    params = init_params(kp, input_dim, hidden_dim, output_dim)

    ref = reference_forward(x, params)

    # Fast path: bf16 MXU operands, f32 accumulation/elementwise -> loosened tolerance.
    out = jax.block_until_ready(hydra_reg_forward(x, params))
    assert out.shape == (batch, output_dim)
    assert jnp.allclose(out, ref, atol=5e-2, rtol=5e-2), "bf16 path mismatch vs reference"

    # f32 parity path: exact-precision check against the PyTorch-style reference.
    out32 = jax.block_until_ready(hydra_reg_forward(x, params, use_bf16=False))
    assert out32.shape == (batch, output_dim)
    assert jnp.allclose(out32, ref, atol=1e-5, rtol=1e-5), "f32 path mismatch vs reference"

    print("KERNEL_OK")
</pallas_src>

<mosaic_0001>
module attributes {stable_mosaic.version = 11 : i64} {
  func.func @hydra_reg_kernel(%arg0: i32, %arg1: memref<1x4x1x128xf32, #tpu.memory_space<vmem>>, %arg2: memref<64x1xf32, #tpu.memory_space<vmem>>, %arg3: memref<64x1xf32, #tpu.memory_space<vmem>>, %arg4: memref<256x256xbf16, #tpu.memory_space<vmem>>, %arg5: memref<256x1xf32, #tpu.memory_space<vmem>>, %arg6: memref<32x256xbf16, #tpu.memory_space<vmem>>, %arg7: memref<32x1xf32, #tpu.memory_space<vmem>>, %arg8: memref<1x32x128xf32, #tpu.memory_space<vmem>>) attributes {dimension_semantics = [#tpu.dimension_semantics<parallel>], iteration_bounds = array<i64: 1>, scalar_prefetch = 0 : i64, scratch_operands = 0 : i64, tpu.core_type = #tpu.core_type<tc>, window_params = [{transform_indices = @transform_0, window_bounds = array<i64: 1, 4, 1, 128>}, {pipeline_mode = #tpu.pipeline_mode<synchronous>, transform_indices = @transform_1, window_bounds = array<i64: 64, 1>}, {pipeline_mode = #tpu.pipeline_mode<synchronous>, transform_indices = @transform_2, window_bounds = array<i64: 64, 1>}, {pipeline_mode = #tpu.pipeline_mode<synchronous>, transform_indices = @transform_3, window_bounds = array<i64: 256, 256>}, {pipeline_mode = #tpu.pipeline_mode<synchronous>, transform_indices = @transform_4, window_bounds = array<i64: 256, 1>}, {pipeline_mode = #tpu.pipeline_mode<synchronous>, transform_indices = @transform_5, window_bounds = array<i64: 32, 256>}, {pipeline_mode = #tpu.pipeline_mode<synchronous>, transform_indices = @transform_6, window_bounds = array<i64: 32, 1>}, {transform_indices = @transform_7, window_bounds = array<i64: 1, 32, 128>}]} {
    %c0 = arith.constant 0 : index
    %c0_0 = arith.constant 0 : index
    %c0_1 = arith.constant 0 : index
    %c0_2 = arith.constant 0 : index
    %0 = vector.load %arg1[%c0, %c0_0, %c0_1, %c0_2] : memref<1x4x1x128xf32, #tpu.memory_space<vmem>>, vector<1x4x1x128xf32>
    %1 = vector.shape_cast %0 : vector<1x4x1x128xf32> to vector<4x1x128xf32>
    %c0_3 = arith.constant 0 : index
    %c0_4 = arith.constant 0 : index
    %2 = vector.load %arg2[%c0_3, %c0_4] : memref<64x1xf32, #tpu.memory_space<vmem>>, vector<64x1xf32>
    %c0_5 = arith.constant 0 : index
    %c0_6 = arith.constant 0 : index
    %3 = vector.load %arg3[%c0_5, %c0_6] : memref<64x1xf32, #tpu.memory_space<vmem>>, vector<64x1xf32>
    %4 = vector.extract_strided_slice %1 {offsets = [0, 0, 0], sizes = [1, 1, 128], strides = [1, 1, 1]} : vector<4x1x128xf32> to vector<1x1x128xf32>
    %5 = vector.shape_cast %4 : vector<1x1x128xf32> to vector<1x128xf32>
    %6 = vector.broadcast %2 : vector<64x1xf32> to vector<64x128xf32>
    %7 = vector.broadcast %5 : vector<1x128xf32> to vector<64x128xf32>
    %8 = arith.mulf %6, %7 : vector<64x128xf32>
    %9 = vector.broadcast %3 : vector<64x1xf32> to vector<64x128xf32>
    %10 = arith.addf %8, %9 : vector<64x128xf32>
    %cst = arith.constant 0.000000e+00 : f32
    %11 = vector.broadcast %cst : f32 to vector<64x128xf32>
    %12 = arith.maximumf %10, %11 : vector<64x128xf32>
    %13 = vector.extract_strided_slice %1 {offsets = [1, 0, 0], sizes = [1, 1, 128], strides = [1, 1, 1]} : vector<4x1x128xf32> to vector<1x1x128xf32>
    %14 = vector.shape_cast %13 : vector<1x1x128xf32> to vector<1x128xf32>
    %15 = vector.broadcast %2 : vector<64x1xf32> to vector<64x128xf32>
    %16 = vector.broadcast %14 : vector<1x128xf32> to vector<64x128xf32>
    %17 = arith.mulf %15, %16 : vector<64x128xf32>
    %18 = vector.broadcast %3 : vector<64x1xf32> to vector<64x128xf32>
    %19 = arith.addf %17, %18 : vector<64x128xf32>
    %cst_7 = arith.constant 0.000000e+00 : f32
    %20 = vector.broadcast %cst_7 : f32 to vector<64x128xf32>
    %21 = arith.maximumf %19, %20 : vector<64x128xf32>
    %22 = vector.extract_strided_slice %1 {offsets = [2, 0, 0], sizes = [1, 1, 128], strides = [1, 1, 1]} : vector<4x1x128xf32> to vector<1x1x128xf32>
    %23 = vector.shape_cast %22 : vector<1x1x128xf32> to vector<1x128xf32>
    %24 = vector.broadcast %2 : vector<64x1xf32> to vector<64x128xf32>
    %25 = vector.broadcast %23 : vector<1x128xf32> to vector<64x128xf32>
    %26 = arith.mulf %24, %25 : vector<64x128xf32>
    %27 = vector.broadcast %3 : vector<64x1xf32> to vector<64x128xf32>
    %28 = arith.addf %26, %27 : vector<64x128xf32>
    %cst_8 = arith.constant 0.000000e+00 : f32
    %29 = vector.broadcast %cst_8 : f32 to vector<64x128xf32>
    %30 = arith.maximumf %28, %29 : vector<64x128xf32>
    %31 = vector.extract_strided_slice %1 {offsets = [3, 0, 0], sizes = [1, 1, 128], strides = [1, 1, 1]} : vector<4x1x128xf32> to vector<1x1x128xf32>
    %32 = vector.shape_cast %31 : vector<1x1x128xf32> to vector<1x128xf32>
    %33 = vector.broadcast %2 : vector<64x1xf32> to vector<64x128xf32>
    %34 = vector.broadcast %32 : vector<1x128xf32> to vector<64x128xf32>
    %35 = arith.mulf %33, %34 : vector<64x128xf32>
    %36 = vector.broadcast %3 : vector<64x1xf32> to vector<64x128xf32>
    %37 = arith.addf %35, %36 : vector<64x128xf32>
    %cst_9 = arith.constant 0.000000e+00 : f32
    %38 = vector.broadcast %cst_9 : f32 to vector<64x128xf32>
    %39 = arith.maximumf %37, %38 : vector<64x128xf32>
    %40 = tpu.concatenate %12, %21, %30, %39 in 0 : vector<64x128xf32>, vector<64x128xf32>, vector<64x128xf32>, vector<64x128xf32> -> vector<256x128xf32>
    %c0_10 = arith.constant 0 : index
    %c0_11 = arith.constant 0 : index
    %41 = vector.load %arg4[%c0_10, %c0_11] : memref<256x256xbf16, #tpu.memory_space<vmem>>, vector<256x256xbf16>
    %42 = arith.truncf %40 : vector<256x128xf32> to vector<256x128xbf16>
    %cst_12 = arith.constant dense<0.000000e+00> : vector<256x128xf32>
    %43 = tpu.matmul %41, %42, %cst_12 {dimension_numbers = #tpu.dot_dimension_numbers<[1], [0], [0], [1], [0, 0, 1, 1], [], []>} : vector<256x256xbf16>, vector<256x128xbf16>, vector<256x128xf32> -> vector<256x128xf32>
    %c0_13 = arith.constant 0 : index
    %c0_14 = arith.constant 0 : index
    %44 = vector.load %arg5[%c0_13, %c0_14] : memref<256x1xf32, #tpu.memory_space<vmem>>, vector<256x1xf32>
    %45 = vector.broadcast %44 : vector<256x1xf32> to vector<256x128xf32>
    %46 = arith.addf %43, %45 : vector<256x128xf32>
    %cst_15 = arith.constant 0.000000e+00 : f32
    %47 = vector.broadcast %cst_15 : f32 to vector<256x128xf32>
    %48 = arith.maximumf %46, %47 : vector<256x128xf32>
    %c0_16 = arith.constant 0 : index
    %c0_17 = arith.constant 0 : index
    %49 = vector.load %arg6[%c0_16, %c0_17] : memref<32x256xbf16, #tpu.memory_space<vmem>>, vector<32x256xbf16>
    %50 = arith.truncf %48 : vector<256x128xf32> to vector<256x128xbf16>
    %cst_18 = arith.constant dense<0.000000e+00> : vector<32x128xf32>
    %51 = tpu.matmul %49, %50, %cst_18 {dimension_numbers = #tpu.dot_dimension_numbers<[1], [0], [0], [1], [0, 0, 1, 1], [], []>} : vector<32x256xbf16>, vector<256x128xbf16>, vector<32x128xf32> -> vector<32x128xf32>
    %c0_19 = arith.constant 0 : index
    %c0_20 = arith.constant 0 : index
    %52 = vector.load %arg7[%c0_19, %c0_20] : memref<32x1xf32, #tpu.memory_space<vmem>>, vector<32x1xf32>
    %53 = vector.broadcast %52 : vector<32x1xf32> to vector<32x128xf32>
    %54 = arith.addf %51, %53 : vector<32x128xf32>
    %c0_21 = arith.constant 0 : index
    %c0_22 = arith.constant 0 : index
    %c0_23 = arith.constant 0 : index
    %55 = vector.load %arg8[%c0_21, %c0_22, %c0_23] : memref<1x32x128xf32, #tpu.memory_space<vmem>>, vector<1x32x128xf32>
    %56 = vector.shape_cast %55 : vector<1x32x128xf32> to vector<32x128xf32>
    %57 = vector.shape_cast %54 : vector<32x128xf32> to vector<1x32x128xf32>
    tpu.vector_store %arg8[%c0_21, %c0_22, %c0_23], %57 {strides = array<i32>} : memref<1x32x128xf32, #tpu.memory_space<vmem>>, vector<1x32x128xf32>,
    return
  }
  func.func @transform_0(%arg0: i32) -> (i32, i32, i32, i32) {
    %c0_i32 = arith.constant 0 : i32
    %c0_i32_0 = arith.constant 0 : i32
    %c0_i32_1 = arith.constant 0 : i32
    %c0_i32_2 = arith.constant 0 : i32
    return %arg0, %c0_i32, %c0_i32_0, %c0_i32_1 : i32, i32, i32, i32
  }
  func.func @transform_1(%arg0: i32) -> (i32, i32) {
    %c0_i32 = arith.constant 0 : i32
    %c0_i32_0 = arith.constant 0 : i32
    %c0_i32_1 = arith.constant 0 : i32
    return %c0_i32, %c0_i32_0 : i32, i32
  }
  func.func @transform_2(%arg0: i32) -> (i32, i32) {
    %c0_i32 = arith.constant 0 : i32
    %c0_i32_0 = arith.constant 0 : i32
    %c0_i32_1 = arith.constant 0 : i32
    return %c0_i32, %c0_i32_0 : i32, i32
  }
  func.func @transform_3(%arg0: i32) -> (i32, i32) {
    %c0_i32 = arith.constant 0 : i32
    %c0_i32_0 = arith.constant 0 : i32
    %c0_i32_1 = arith.constant 0 : i32
    return %c0_i32, %c0_i32_0 : i32, i32
  }
  func.func @transform_4(%arg0: i32) -> (i32, i32) {
    %c0_i32 = arith.constant 0 : i32
    %c0_i32_0 = arith.constant 0 : i32
    %c0_i32_1 = arith.constant 0 : i32
    return %c0_i32, %c0_i32_0 : i32, i32
  }
  func.func @transform_5(%arg0: i32) -> (i32, i32) {
    %c0_i32 = arith.constant 0 : i32
    %c0_i32_0 = arith.constant 0 : i32
    %c0_i32_1 = arith.constant 0 : i32
    return %c0_i32, %c0_i32_0 : i32, i32
  }
  func.func @transform_6(%arg0: i32) -> (i32, i32) {
    %c0_i32 = arith.constant 0 : i32
    %c0_i32_0 = arith.constant 0 : i32
    %c0_i32_1 = arith.constant 0 : i32
    return %c0_i32, %c0_i32_0 : i32, i32
  }
  func.func @transform_7(%arg0: i32) -> (i32, i32, i32) {
    %c0_i32 = arith.constant 0 : i32
    %c0_i32_0 = arith.constant 0 : i32
    %c0_i32_1 = arith.constant 0 : i32
    return %arg0, %c0_i32, %c0_i32_0 : i32, i32, i32
  }
}

</mosaic_0001>

<bundles_post_ra>
// kernel: tpu_custom_call.1
= control target key start
LH: loop header
LB: loop body
LE: loop exit
PB: predicated region body
PF: predicated region fallthrough
CT: control target
= control target key end

     0   :  { %v1254_v2 = vmov 0   ;;  %s1788_s0 = inlined_call_operand.vmem [shape: f32[1,4,1,128], index: 0, kind: input, shape index: {}]   ;;  %s1789_s1 = inlined_call_operand.vmem [shape: f32[64,1], index: 1, kind: input, shape index: {}]   ;;  %s1790_s2 = inlined_call_operand.vmem [shape: f32[64,1], index: 2, kind: input, shape index: {}]   ;;  %s1791_s3 = inlined_call_operand.vmem [shape: bf16[256,256], index: 3, kind: input, shape index: {}]   ;;  %s1792_s4 = inlined_call_operand.vmem [shape: f32[256,1], index: 4, kind: input, shape index: {}]   ;;  %s1793_s5 = inlined_call_operand.vmem [shape: bf16[32,256], index: 5, kind: input, shape index: {}]   ;;  %s1794_s6 = inlined_call_operand.vmem [shape: f32[32,1], index: 6, kind: input, shape index: {}]   ;;  %s1795_s7 = inlined_call_operand.hbm [shape: f32[1,32,128], index: 7, kind: output, shape index: {}]  }
   0x1   :  { %v40_v0 = vld [vmem:[%s1790_s2] sm:$0xff]  ;;  %1175 = vset.pattern.permute.xlu1 %v1254_v2  ;;  %1174 = vset.pattern.permute.xlu0 %v1254_v2  ;;  %v41_v3 = vld [vmem:[%s1790_s2 + $0x8] sm:$0xff]  ;;  %v35_v5 = vld [vmem:[%s1789_s1 + $0x18] sm:$0xff] }
   0x2   :  { %v32_v1 = vld [vmem:[%s1789_s1] sm:$0xff]  ;;  %104 = vperm.xlu1 %1175, %v40_v0   ;;  %v33_v4 = vld [vmem:[%s1789_s1 + $0x8] sm:$0xff]  ;;  %v34_v6 = vld [vmem:[%s1789_s1 + $0x10] sm:$0xff] }
   0x3   :  { %50 = vperm.xlu0 %1174, %v32_v1   ;;  %v43_v7 = vld [vmem:[%s1790_s2 + $0x18] sm:$0xff]  ;;  %v42_v8 = vld [vmem:[%s1790_s2 + $0x10] sm:$0xff]  ;;  %v37_v9 = vld [vmem:[%s1789_s1 + $0x28] sm:$0xff] }
   0x4   :  { %v36_v10 = vld [vmem:[%s1789_s1 + $0x20] sm:$0xff]  ;;  %v45_v11 = vld [vmem:[%s1790_s2 + $0x28] sm:$0xff]  ;;  %v39_v13 = vld [vmem:[%s1789_s1 + $0x38] sm:$0xff] }
   0x5   :  { %v44_v12 = vld [vmem:[%s1790_s2 + $0x20] sm:$0xff]  ;;  %v38_v14 = vld [vmem:[%s1789_s1 + $0x30] sm:$0xff]  ;;  %v47_v15 = vld [vmem:[%s1790_s2 + $0x38] sm:$0xff] }
   0x6   :  { %109 = vperm.xlu1 %1175, %v41_v3   ;;  %v46_v16 = vld [vmem:[%s1790_s2 + $0x30] sm:$0xff] }
   0x7   :  { %55 = vperm.xlu0 %1174, %v33_v4  }
   0xa   :  { %65 = vperm.xlu1 %1175, %v35_v5  }
   0xb   :  { %60 = vperm.xlu0 %1174, %v34_v6  }
   0xe   :  { %119 = vperm.xlu1 %1175, %v43_v7  }
   0xf   :  { %114 = vperm.xlu0 %1174, %v42_v8  }
  0x12   :  { %75 = vperm.xlu1 %1175, %v37_v9  }
  0x13   :  { %70 = vperm.xlu0 %1174, %v36_v10  }
  0x16   :  { %129 = vperm.xlu1 %1175, %v45_v11  }
  0x17   :  { %124 = vperm.xlu0 %1174, %v44_v12  }
  0x1a   :  { %85 = vperm.xlu1 %1175, %v39_v13  }
  0x1b   :  { %80 = vperm.xlu0 %1174, %v38_v14  }
  0x1e   :  { %139 = vperm.xlu1 %1175, %v47_v15  }
  0x1f   :  { %134 = vperm.xlu0 %1174, %v46_v16  }
  0x20   :  { %12 = vsyncpa [#allocation3], 0  ;;  %v313_v17 = vld [vmem:[%s1792_s4 + $0x88] sm:$0xff]  ;;  %v312_v18 = vld [vmem:[%s1792_s4 + $0x80] sm:$0xff] }
  0x21   :  { %v297_v19 = vld [vmem:[%s1792_s4 + $0x8] sm:$0xff]  ;;  %v296_v20 = vld [vmem:[%s1792_s4] sm:$0xff]  ;;  %v315_v21 = vld [vmem:[%s1792_s4 + $0x98] sm:$0xff] }
  0x22   :  { %415 = vperm.xlu1 %1175, %v313_v17   ;;  %v314_v22 = vld [vmem:[%s1792_s4 + $0x90] sm:$0xff]  ;;  %v299_v23 = vld [vmem:[%s1792_s4 + $0x18] sm:$0xff]  ;;  %v317_v25 = vld [vmem:[%s1792_s4 + $0xa8] sm:$0xff] }
  0x23   :  { %410 = vperm.xlu0 %1174, %v312_v18   ;;  %v298_v24 = vld [vmem:[%s1792_s4 + $0x10] sm:$0xff]  ;;  %v316_v26 = vld [vmem:[%s1792_s4 + $0xa0] sm:$0xff]  ;;  %v301_v27 = vld [vmem:[%s1792_s4 + $0x28] sm:$0xff] }
  0x24   :  { %v300_v28 = vld [vmem:[%s1792_s4 + $0x20] sm:$0xff]  ;;  %v319_v30 = vld [vmem:[%s1792_s4 + $0xb8] sm:$0xff]  ;;  %v318_v31 = vld [vmem:[%s1792_s4 + $0xb0] sm:$0xff] }
  0x25   :  { %v1178_v29 = vld [vmem:[%s1791_s3 + $0x4] ss:$8 sps:$4 sm:$0xff]   ;;  %v1181_v32 = vld [vmem:[%s1791_s3 + $0x94] ss:$8 sps:$4 sm:$0xff]   ;;  %v1467_v57 = vld [vmem:[%s1788_s0] ss:$0 sm:$0xff] }
  0x26   :  { %335 = vperm.xlu1 %1175, %v297_v19   ;;  %680 = vmatprep.mubr.bf16.mxu0 %v1178_v29  ;;  %v303_v33 = vld [vmem:[%s1792_s4 + $0x38] sm:$0xff]  ;;  %v302_v34 = vld [vmem:[%s1792_s4 + $0x30] sm:$0xff]  ;;  %v321_v35 = vld [vmem:[%s1792_s4 + $0xc8] sm:$0xff] }
  0x27   :  { %330 = vperm.xlu0 %1174, %v296_v20   ;;  %752 = vmatprep.mubr.bf16.mxu1 %v1181_v32  ;;  %v320_v36 = vld [vmem:[%s1792_s4 + $0xc0] sm:$0xff]  ;;  %v305_v37 = vld [vmem:[%s1792_s4 + $0x48] sm:$0xff]  ;;  %v323_v39 = vld [vmem:[%s1792_s4 + $0xd8] sm:$0xff] }
  0x28   :  { %v304_v38 = vld [vmem:[%s1792_s4 + $0x40] sm:$0xff]  ;;  %v322_v40 = vld [vmem:[%s1792_s4 + $0xd0] sm:$0xff]  ;;  %v307_v41 = vld [vmem:[%s1792_s4 + $0x58] sm:$0xff] }
  0x29   :  { %v306_v42 = vld [vmem:[%s1792_s4 + $0x50] sm:$0xff]  ;;  %v325_v43 = vld [vmem:[%s1792_s4 + $0xe8] sm:$0xff]  ;;  %v324_v44 = vld [vmem:[%s1792_s4 + $0xe0] sm:$0xff] }
  0x2a   :  { %425 = vperm.xlu1 %1175, %v315_v21   ;;  %v309_v45 = vld [vmem:[%s1792_s4 + $0x68] sm:$0xff]  ;;  %v308_v46 = vld [vmem:[%s1792_s4 + $0x60] sm:$0xff]  ;;  %v327_v47 = vld [vmem:[%s1792_s4 + $0xf8] sm:$0xff] }
  0x2b   :  { %420 = vperm.xlu0 %1174, %v314_v22   ;;  %v326_v48 = vld [vmem:[%s1792_s4 + $0xf0] sm:$0xff]  ;;  %v311_v49 = vld [vmem:[%s1792_s4 + $0x78] sm:$0xff]  ;;  %v862_v51 = vld [vmem:[%s1794_s6 + $0x8] sm:$0xff] }
  0x2c   :  { %v310_v50 = vld [vmem:[%s1792_s4 + $0x70] sm:$0xff]  ;;  %v861_v52 = vld [vmem:[%s1794_s6] sm:$0xff]  ;;  %v864_v53 = vld [vmem:[%s1794_s6 + $0x18] sm:$0xff] }
  0x2d   :  { %v863_v54 = vld [vmem:[%s1794_s6 + $0x10] sm:$0xff]  ;;  %v1472_v58 = vld [vmem:[%s1788_s0 + $0x2] ss:$0 sm:$0xff]  ;;  %v1513_v29 = vld [vmem:[%s1788_s0 + $0x3] ss:$0 sm:$0xff] }
  0x2e   :  { %345 = vperm.xlu1 %1175, %v299_v23  }
  0x2f   :  { %340 = vperm.xlu0 %1174, %v298_v24  }
  0x32   :  { %435 = vperm.xlu1 %1175, %v317_v25  }
  0x33   :  { %430 = vperm.xlu0 %1174, %v316_v26  }
  0x36   :  { %355 = vperm.xlu1 %1175, %v301_v27  }
  0x37   :  { %350 = vperm.xlu0 %1174, %v300_v28  }
  0x3a   :  { %445 = vperm.xlu1 %1175, %v319_v30  }
  0x3b   :  { %440 = vperm.xlu0 %1174, %v318_v31  }
  0x3e   :  { %365 = vperm.xlu1 %1175, %v303_v33  }
  0x3f   :  { %360 = vperm.xlu0 %1174, %v302_v34  }
  0x42   :  { %455 = vperm.xlu1 %1175, %v321_v35  }
  0x43   :  { %450 = vperm.xlu0 %1174, %v320_v36  }
  0x46   :  { %375 = vperm.xlu1 %1175, %v305_v37  }
  0x47   :  { %370 = vperm.xlu0 %1174, %v304_v38  }
  0x4a   :  { %465 = vperm.xlu1 %1175, %v323_v39  }
  0x4b   :  { %460 = vperm.xlu0 %1174, %v322_v40  }
  0x4e   :  { %385 = vperm.xlu1 %1175, %v307_v41  }
  0x4f   :  { %380 = vperm.xlu0 %1174, %v306_v42  }
  0x52   :  { %475 = vperm.xlu1 %1175, %v325_v43  }
  0x53   :  { %470 = vperm.xlu0 %1174, %v324_v44   ;;  %v1537_v44 = vld [vmem:[%s1788_s0 + $0x1] ss:$0 sm:$0xff] }
  0x56   :  { %395 = vperm.xlu1 %1175, %v309_v45  }
  0x57   :  { %390 = vperm.xlu0 %1174, %v308_v46  }
  0x5a   :  { %485 = vperm.xlu1 %1175, %v327_v47  }
  0x5b   :  { %480 = vperm.xlu0 %1174, %v326_v48  }
  0x5e   :  { %405 = vperm.xlu1 %1175, %v311_v49  }
  0x5f   :  { %400 = vperm.xlu0 %1174, %v310_v50  }
  0x62   :  { %872 = vperm.xlu1 %1175, %v862_v51  }
  0x63   :  { %867 = vperm.xlu0 %1174, %v861_v52  }
  0x66   :  { %882 = vperm.xlu1 %1175, %v864_v53  }
  0x67   :  { %877 = vperm.xlu0 %1174, %v863_v54  }
  0x81   :  { %v1460_v55 = vpop.permute.xlu1 %104 }
  0x82   :  { %v1462_v56 = vpop.permute.xlu0 %50 }
  0x83   :  { %v94_v61 = vmul.f32 %v1467_v57, %v1462_v56  ;;  %v194_v62 = vmul.f32 %v1472_v58, %v1462_v56  ;;  %v224_v40 = vmul.f32 %v1513_v29, %v1462_v56  ;;  %v164_v52 = vmul.f32 %v1537_v44, %v1462_v56 }
  0x85   :  { %v1474_v59 = vpop.permute.xlu1 %109  ;;  %v202_v5 = vadd.f32 %v194_v62, %v1460_v55  ;;  %v142_v6 = vadd.f32 %v1460_v55, %v94_v61  ;;  %v232_v53 = vadd.f32 %v224_v40, %v1460_v55 }
  0x86   :  { %v56_v60 = vpop.permute.xlu0 %55 }
  0x87   :  { %v95_v63 = vmul.f32 %v1467_v57, %v56_v60  ;;  %v195_v0 = vmul.f32 %v1472_v58, %v56_v60  ;;  %v210_v17 = vmax.f32 %v202_v5, 0.0  ;;  %v150_v18 = vmax.f32 %v142_v6, 0.0 }
  0x88   :  { %v225_v41 = vmul.f32 %v1513_v29, %v56_v60  ;;  %v165_v47 = vmul.f32 %v1537_v44, %v56_v60 }
  0x89   :  { %v203_v1 = vadd.f32 %v195_v0, %v1474_v59  ;;  %v143_v2 = vadd.f32 %v1474_v59, %v95_v63  ;;  %v1484_v3 = vpop.permute.xlu1 %65 }
  0x8a   :  { %v1486_v4 = vpop.permute.xlu0 %60  ;;  %v97_v7 = vmul.f32 %v1467_v57, %v1484_v3  ;;  %v197_v8 = vmul.f32 %v1472_v58, %v1484_v3  ;;  %v233_v54 = vadd.f32 %v225_v41, %v1474_v59  ;;  %v227_v0 = vmul.f32 %v1513_v29, %v1484_v3 }
  0x8b   :  { %v211_v9 = vmax.f32 %v203_v1, 0.0  ;;  %v151_v10 = vmax.f32 %v143_v2, 0.0  ;;  %v96_v11 = vmul.f32 %v1467_v57, %v1486_v4  ;;  %v196_v12 = vmul.f32 %v1472_v58, %v1486_v4 }
  0x8c   :  { %v173_v6 = vadd.f32 %v165_v47, %v1474_v59 }
  0x8d   :  { %v1498_v13 = vpop.permute.xlu1 %119  ;;  %v288_v21 = vpack.c.bf16 %v211_v9, %v210_v17  ;;  %v280_v22 = vpack.c.bf16 %v151_v10, %v150_v18 }
  0x8e   :  { %v1500_v14 = vpop.permute.xlu0 %114  ;;  %v145_v15 = vadd.f32 %v1498_v13, %v97_v7  ;;  %v205_v16 = vadd.f32 %v197_v8, %v1498_v13  ;;  %v226_v7 = vmul.f32 %v1513_v29, %v1486_v4  ;;  %v235_v59 = vadd.f32 %v227_v0, %v1498_v13  ;;  %v1176_v0 = vld [vmem:[%s1791_s3] ss:$8 sps:$4 sm:$0xff]  }
  0x8f   :  { %v144_v19 = vadd.f32 %v1500_v14, %v96_v11  ;;  %v204_v20 = vadd.f32 %v196_v12, %v1500_v14  ;;  %1014 = vmatprep.subr.bf16.mxu0 %v288_v21  ;;  %1154 = vmatprep.subr.bf16.mxu1 %v288_v21  ;;  %v172_v21 = vadd.f32 %v164_v52, %v1460_v55 }
  0x90   :  { %v213_v23 = vmax.f32 %v205_v16, 0.0  ;;  %v153_v24 = vmax.f32 %v145_v15, 0.0  ;;  %1015 = vmatpush3.bf16.msra.mxu0 %v280_v22  ;;  %1162 = vmatpush3.bf16.msra.mxu1 %v280_v22  ;;  %v234_v12 = vadd.f32 %v226_v7, %v1500_v14  ;;  %v1188_v7 = vld [vmem:[%s1791_s3 + $0x24] ss:$8 sps:$4 sm:$0xff]  }
  0x91   :  { %v1506_v25 = vpop.permute.xlu1 %75  ;;  %v212_v27 = vmax.f32 %v204_v20, 0.0  ;;  %v152_v28 = vmax.f32 %v144_v19, 0.0  ;;  %v241_v19 = vmax.f32 %v233_v54, 0.0 }
  0x92   :  { %v1508_v26 = vpop.permute.xlu0 %70  ;;  %v99_v30 = vmul.f32 %v1467_v57, %v1506_v25  ;;  %v199_v31 = vmul.f32 %v1472_v58, %v1506_v25  ;;  %v229_v22 = vmul.f32 %v1513_v29, %v1506_v25  ;;  %v169_v55 = vmul.f32 %v1537_v44, %v1506_v25 }
  0x93   :  { %v289_v32 = vpack.c.bf16 %v213_v23, %v212_v27  ;;  %v281_v33 = vpack.c.bf16 %v153_v24, %v152_v28  ;;  %v98_v34 = vmul.f32 %v1467_v57, %v1508_v26  ;;  %v198_v35 = vmul.f32 %v1472_v58, %v1508_v26 }
  0x94   :  { %v228_v23 = vmul.f32 %v1513_v29, %v1508_v26  ;;  %v181_v28 = vmax.f32 %v173_v6, 0.0  ;;  %v1187_v6 = vld [vmem:[%s1791_s3 + $0xa0] ss:$8 sps:$4 sm:$0xff]  }
  0x95   :  { %v1523_v36 = vpop.permute.xlu1 %129  ;;  %1016 = vmatprep.subr.bf16.mxu0 %v289_v32  ;;  %1155 = vmatprep.subr.bf16.mxu1 %v289_v32 }
  0x96   :  { %v1525_v37 = vpop.permute.xlu0 %124  ;;  %v147_v38 = vadd.f32 %v1523_v36, %v99_v30  ;;  %v207_v39 = vadd.f32 %v199_v31, %v1523_v36  ;;  %1017 = vmatpush3.bf16.msra.mxu0 %v281_v33  ;;  %1163 = vmatpush3.bf16.msra.mxu1 %v281_v33  ;;  %v242_v30 = vmax.f32 %v234_v12, 0.0  ;;  %v243_v31 = vmax.f32 %v235_v59, 0.0  ;;  %v1199_v59 = vld [vmem:[%s1791_s3 + $0xc0] ss:$8 sps:$4 sm:$0xff]   ;;  %v1200_v12 = vld [vmem:[%s1791_s3 + $0x44] ss:$8 sps:$4 sm:$0xff]  }
  0x97   :  { %v146_v42 = vadd.f32 %v1525_v37, %v98_v34  ;;  %v206_v43 = vadd.f32 %v198_v35, %v1525_v37  ;;  %v237_v32 = vadd.f32 %v229_v22, %v1523_v36  ;;  %v168_v33 = vmul.f32 %v1537_v44, %v1508_v26  ;;  %v1216_v22 = vld [vmem:[%s1791_s3 + $0x60] ss:$8 sps:$4 sm:$0xff]  }
  0x98   :  { %v215_v45 = vmax.f32 %v207_v39, 0.0  ;;  %v155_v46 = vmax.f32 %v147_v38, 0.0  ;;  %v180_v34 = vmax.f32 %v172_v21, 0.0  ;;  %v177_v41 = vadd.f32 %v169_v55, %v1523_v36  ;;  %v1214_v21 = vld [vmem:[%s1791_s3 + $0xf4] ss:$8 sps:$4 sm:$0xff]  }
  0x99   :  { %v1540_v48 = vpop.permute.xlu1 %85  ;;  %v214_v50 = vmax.f32 %v206_v43, 0.0  ;;  %v154_v51 = vmax.f32 %v146_v42, 0.0  ;;  %v176_v25 = vadd.f32 %v168_v33, %v1525_v37  ;;  %v293_v43 = vpack.c.bf16 %v243_v31, %v242_v30  ;;  %v1223_v30 = vld [vmem:[%s1791_s3 + $0x80] ss:$8 sps:$4 sm:$0xff]  }
  0x9a   :  { %v1542_v49 = vpop.permute.xlu0 %80  ;;  %v101_v61 = vmul.f32 %v1467_v57, %v1540_v48  ;;  %v201_v62 = vmul.f32 %v1472_v58, %v1540_v48  ;;  %v231_v35 = vmul.f32 %v1513_v29, %v1540_v48  ;;  %v284_v42 = vpack.c.bf16 %v181_v28, %v180_v34  ;;  %v1221_v28 = vld [vmem:[%s1791_s3 + $0x84] ss:$8 sps:$4 sm:$0xff]  }
  0x9b   :  { %v290_v60 = vpack.c.bf16 %v215_v45, %v214_v50  ;;  %v282_v63 = vpack.c.bf16 %v155_v46, %v154_v51  ;;  %v100_v1 = vmul.f32 %v1467_v57, %v1542_v49  ;;  %v200_v56 = vmul.f32 %v1472_v58, %v1542_v49 }
  0x9c   :  { %v167_v57 = vmul.f32 %v1537_v44, %v1484_v3  ;;  %v166_v58 = vmul.f32 %v1537_v44, %v1486_v4  ;;  %v240_v4 = vmax.f32 %v232_v53, 0.0  ;;  %v230_v38 = vmul.f32 %v1513_v29, %v1542_v49 }
  0x9d   :  { %v1558_v2 = vpop.permute.xlu1 %139  ;;  %1018 = vmatprep.subr.bf16.mxu0 %v290_v60  ;;  %1156 = vmatprep.subr.bf16.mxu1 %v290_v60  ;;  %v245_v47 = vmax.f32 %v237_v32, 0.0  ;;  %v171_v50 = vmul.f32 %v1537_v44, %v1540_v48  ;;  %v170_v29 = vmul.f32 %v1537_v44, %v1542_v49  ;;  %v184_v52 = vmax.f32 %v176_v25, 0.0 }
  0x9e   :  { %v1560_v5 = vpop.permute.xlu0 %134  ;;  %v149_v8 = vadd.f32 %v1558_v2, %v101_v61  ;;  %v209_v9 = vadd.f32 %v201_v62, %v1558_v2  ;;  %1019 = vmatpush3.bf16.msra.mxu0 %v282_v63  ;;  %1164 = vmatpush3.bf16.msra.mxu1 %v282_v63  ;;  %v175_v3 = vadd.f32 %v167_v57, %v1498_v13  ;;  %v185_v53 = vmax.f32 %v177_v41, 0.0  ;;  %v1193_v57 = vld [vmem:[%s1791_s3 + $0xb0] ss:$8 sps:$4 sm:$0xff]  }
  0x9f   :  { %v148_v10 = vadd.f32 %v1560_v5, %v100_v1  ;;  %v208_v11 = vadd.f32 %v200_v56, %v1560_v5  ;;  %v174_v20 = vadd.f32 %v166_v58, %v1500_v14  ;;  %v236_v13 = vadd.f32 %v228_v23, %v1525_v37  ;;  %v1179_v1 = vld [vmem:[%s1791_s3 + $0x90] ss:$8 sps:$4 sm:$0xff]   ;;  %v1182_v56 = vld [vmem:[%s1791_s3 + $0x14] ss:$8 sps:$4 sm:$0xff]  }
  0xa0   :  { %v217_v15 = vmax.f32 %v209_v9, 0.0  ;;  %v157_v16 = vmax.f32 %v149_v8, 0.0  ;;  %v292_v14 = vpack.c.bf16 %v241_v19, %v240_v4  ;;  %v183_v40 = vmax.f32 %v175_v3, 0.0  ;;  %v1190_v8 = vld [vmem:[%s1791_s3 + $0xb4] ss:$8 sps:$4 sm:$0xff]  }
  0xa1   :  { %v216_v17 = vmax.f32 %v208_v11, 0.0  ;;  %v156_v18 = vmax.f32 %v148_v10, 0.0  ;;  %v182_v39 = vmax.f32 %v174_v20, 0.0  ;;  %v239_v26 = vadd.f32 %v231_v35, %v1558_v2  ;;  %v1192_v9 = vld [vmem:[%s1791_s3 + $0x20] ss:$8 sps:$4 sm:$0xff]   ;;  %v1694_v32 = vpop.permute.xlu1 %415 }
  0xa2   :  { %v238_v45 = vadd.f32 %v230_v38, %v1560_v5  ;;  %v244_v46 = vmax.f32 %v236_v13, 0.0  ;;  %v179_v37 = vadd.f32 %v171_v50, %v1558_v2  ;;  %v178_v51 = vadd.f32 %v170_v29, %v1560_v5  ;;  %v1184_v2 = vld [vmem:[%s1791_s3 + $0xa4] ss:$8 sps:$4 sm:$0xff]   ;;  %v1186_v5 = vld [vmem:[%s1791_s3 + $0x10] ss:$8 sps:$4 sm:$0xff]   ;;  %v1692_v31 = vpop.permute.xlu0 %410 }
  0xa3   :  { %v291_v24 = vpack.c.bf16 %v217_v15, %v216_v17  ;;  %v283_v27 = vpack.c.bf16 %v157_v16, %v156_v18  ;;  %v285_v36 = vpack.c.bf16 %v183_v40, %v182_v39  ;;  %v247_v62 = vmax.f32 %v239_v26, 0.0  ;;  %v1194_v58 = vld [vmem:[%s1791_s3 + $0x34] ss:$8 sps:$4 sm:$0xff]   ;;  %v1196_v10 = vld [vmem:[%s1791_s3 + $0xc4] ss:$8 sps:$4 sm:$0xff]  }
  0xa4   :  { %v294_v54 = vpack.c.bf16 %v245_v47, %v244_v46  ;;  %v246_v61 = vmax.f32 %v238_v45, 0.0  ;;  %v286_v48 = vpack.c.bf16 %v185_v53, %v184_v52  ;;  %v186_v44 = vmax.f32 %v178_v51, 0.0  ;;  %v1198_v11 = vld [vmem:[%s1791_s3 + $0x30] ss:$8 sps:$4 sm:$0xff]   ;;  %v1202_v15 = vld [vmem:[%s1791_s3 + $0xd4] ss:$8 sps:$4 sm:$0xff]  }
  0xa5   :  { %1020 = vmatprep.subr.bf16.mxu0 %v291_v24  ;;  %1157 = vmatprep.subr.bf16.mxu1 %v291_v24  ;;  %v187_v49 = vmax.f32 %v179_v37, 0.0  ;;  %v1204_v16 = vld [vmem:[%s1791_s3 + $0x40] ss:$8 sps:$4 sm:$0xff]   ;;  %v1205_v17 = vld [vmem:[%s1791_s3 + $0xd0] ss:$8 sps:$4 sm:$0xff]  }
  0xa6   :  { %1021 = vmatpush3.bf16.msra.mxu0 %v283_v27  ;;  %1165 = vmatpush3.bf16.msra.mxu1 %v283_v27  ;;  %v295_v60 = vpack.c.bf16 %v247_v62, %v246_v61  ;;  %v1206_v18 = vld [vmem:[%s1791_s3 + $0x54] ss:$8 sps:$4 sm:$0xff]   ;;  %v1208_v19 = vld [vmem:[%s1791_s3 + $0xe4] ss:$8 sps:$4 sm:$0xff]   ;;  %v1210_v3 = vld [vmem:[%s1791_s3 + $0x50] ss:$8 sps:$4 sm:$0xff]   ;;  %v331_v13 = vpop.permute.xlu0 %330 }
  0xa7   :  { %1022 = vmatprep.subr.bf16.mxu0 %v292_v14  ;;  %1158 = vmatprep.subr.bf16.mxu1 %v292_v14  ;;  %v287_v63 = vpack.c.bf16 %v187_v49, %v186_v44  ;;  %v1211_v20 = vld [vmem:[%s1791_s3 + $0xe0] ss:$8 sps:$4 sm:$0xff]   ;;  %v1212_v4 = vld [vmem:[%s1791_s3 + $0x64] ss:$8 sps:$4 sm:$0xff]   ;;  %v1217_v23 = vld [vmem:[%s1791_s3 + $0xf0] ss:$8 sps:$4 sm:$0xff]   ;;  %v336_v14 = vpop.permute.xlu1 %335 }
  0xa8   :  { %v1218_v24 = vld [vmem:[%s1791_s3 + $0x74] ss:$8 sps:$4 sm:$0xff]   ;;  %v1220_v27 = vld [vmem:[%s1791_s3 + $0x70] ss:$8 sps:$4 sm:$0xff]   ;;  %v1226_v39 = vld [vmem:[%s1793_s5 + $0x4] ss:$8 sps:$4 sm:$0xff]  }
  0xaa   :  { %1023 = vmatpush3.bf16.msra.mxu0 %v284_v42  ;;  %1166 = vmatpush3.bf16.msra.mxu1 %v284_v42  ;;  %v421_v55 = vpop.permute.xlu0 %420 }
  0xab   :  { %1024 = vmatprep.subr.bf16.mxu0 %v293_v43  ;;  %1159 = vmatprep.subr.bf16.mxu1 %v293_v43  ;;  %v426_v33 = vpop.permute.xlu1 %425 }
  0xae   :  { %1025 = vmatpush3.bf16.msra.mxu0 %v285_v36  ;;  %1167 = vmatpush3.bf16.msra.mxu1 %v285_v36  ;;  %v341_v34 = vpop.permute.xlu0 %340 }
  0xaf   :  { %1026 = vmatprep.subr.bf16.mxu0 %v294_v54  ;;  %1160 = vmatprep.subr.bf16.mxu1 %v294_v54  ;;  %v346_v35 = vpop.permute.xlu1 %345 }
  0xb2   :  { %1027 = vmatpush3.bf16.msra.mxu0 %v286_v48  ;;  %1168 = vmatpush3.bf16.msra.mxu1 %v286_v48  ;;  %v431_v38 = vpop.permute.xlu0 %430 }
  0xb3   :  { %1028 = vmatprep.subr.bf16.mxu0 %v295_v60  ;;  %1161 = vmatprep.subr.bf16.mxu1 %v295_v60  ;;  %v436_v40 = vpop.permute.xlu1 %435 }
  0xb6   :  { %1029 = vmatpush3.bf16.msra.mxu0 %v287_v63  ;;  %1169 = vmatpush3.bf16.msra.mxu1 %v287_v63  ;;  %v1699_v41 = vpop.permute.xlu0 %350 }
  0xb7   :  { %v1701_v25 = vpop.permute.xlu1 %355 }
  0xb9   :  { %681 = vmatmul.mubr.bf16.vlgmr.msra.gmra.mrb[0].mxu0 %v1176_v0  ;;  %753 = vmatmul.mubr.bf16.vlgmr.msra.gmra.mrb[0].mxu1 %v1179_v1 }
  0xba   :  { %688 = vmatprep.mubr.bf16.mxu0 %v1182_v56  ;;  %760 = vmatprep.mubr.bf16.mxu1 %v1184_v2  ;;  %v1703_v42 = vpop.permute.xlu0 %440 }
  0xbb   :  { %v1705_v43 = vpop.permute.xlu1 %445 }
  0xbe   :  { %v1707_v26 = vpop.permute.xlu0 %360 }
  0xbf   :  { %v1709_v45 = vpop.permute.xlu1 %365 }
  0xc1   :  { %689 = vmatmul.mubr.bf16.gmra.mrb[4].mxu0 %v1186_v5  ;;  %761 = vmatmul.mubr.bf16.gmra.mrb[4].mxu1 %v1187_v6 }
  0xc2   :  { %696 = vmatprep.mubr.bf16.mxu0 %v1188_v7  ;;  %768 = vmatprep.mubr.bf16.mxu1 %v1190_v8  ;;  %v1711_v46 = vpop.permute.xlu0 %450 }
  0xc3   :  { %v1713_v0 = vpop.permute.xlu1 %455 }
  0xc6   :  { %v1715_v1 = vpop.permute.xlu0 %370 }
  0xc9   :  { %697 = vmatmul.mubr.bf16.gmra.mrb[8].mxu0 %v1192_v9  ;;  %769 = vmatmul.mubr.bf16.gmra.mrb[8].mxu1 %v1193_v57 }
  0xca   :  { %704 = vmatprep.mubr.bf16.mxu0 %v1194_v58  ;;  %776 = vmatprep.mubr.bf16.mxu1 %v1196_v10 }
  0xd1   :  { %705 = vmatmul.mubr.bf16.gmra.mrb[12].mxu0 %v1198_v11  ;;  %777 = vmatmul.mubr.bf16.gmra.mrb[12].mxu1 %v1199_v59 }
  0xd2   :  { %712 = vmatprep.mubr.bf16.mxu0 %v1200_v12  ;;  %784 = vmatprep.mubr.bf16.mxu1 %v1202_v15 }
  0xd9   :  { %713 = vmatmul.mubr.bf16.gmra.mrb[16].mxu0 %v1204_v16  ;;  %785 = vmatmul.mubr.bf16.gmra.mrb[16].mxu1 %v1205_v17 }
  0xda   :  { %720 = vmatprep.mubr.bf16.mxu0 %v1206_v18  ;;  %792 = vmatprep.mubr.bf16.mxu1 %v1208_v19 }
  0xe1   :  { %721 = vmatmul.mubr.bf16.gmra.mrb[20].mxu0 %v1210_v3  ;;  %793 = vmatmul.mubr.bf16.gmra.mrb[20].mxu1 %v1211_v20 }
  0xe2   :  { %728 = vmatprep.mubr.bf16.mxu0 %v1212_v4  ;;  %800 = vmatprep.mubr.bf16.mxu1 %v1214_v21 }
  0xe9   :  { %729 = vmatmul.mubr.bf16.gmra.mrb[24].mxu0 %v1216_v22  ;;  %801 = vmatmul.mubr.bf16.gmra.mrb[24].mxu1 %v1217_v23  ;;  %v1721_v22 = vpop.permute.xlu1 %375  ;;  %v1723_v23 = vpop.permute.xlu0 %460 }
  0xea   :  { %736 = vmatprep.mubr.bf16.mxu0 %v1218_v24  ;;  %937 = vmatprep.mubr.bf16.mxu1 %v1226_v39 }
  0xf1   :  { %737 = vmatmul.mubr.bf16.gmra.mrb[28].mxu0 %v1220_v27 }
  0xf2   :  { %744 = vmatprep.mubr.bf16.mxu0 %v1221_v28 }
  0xf9   :  { %745 = vmatmul.mubr.bf16.gmra.mrb[32].mxu0 %v1223_v30 }
 0x18c   :  { %v1030_v47 = vpop.f32.mrb[0].mxu0  ;;  %v1084_v50 = vpop.f32.mrb[0].mxu1 }
 0x18d   :  { %v1031_v29 = vpop.f32.mrb[1].mxu0  ;;  %v1085_v36 = vpop.f32.mrb[1].mxu1 }
 0x18e   :  { %v1032_v37 = vadd.f32 %v1031_v29, %v1030_v47  ;;  %v1086_v51 = vadd.f32 %v1085_v36, %v1084_v50  ;;  %v1033_v52 = vpop.f32.mrb[2].mxu0  ;;  %v1087_v53 = vpop.f32.mrb[2].mxu1 }
 0x18f   :  { %v1034_v54 = vpop.f32.mrb[3].mxu0  ;;  %v1088_v61 = vpop.f32.mrb[3].mxu1 }
 0x190   :  { %v683_v62 = vadd.f32 %v1032_v37, %v331_v13  ;;  %v755_v48 = vadd.f32 %v1086_v51, %v421_v55  ;;  %v1035_v44 = vadd.f32 %v1034_v54, %v1033_v52  ;;  %v1089_v49 = vadd.f32 %v1088_v61, %v1087_v53  ;;  %v466_v61 = vpop.permute.xlu1 %465 }
 0x192   :  { %v686_v60 = vadd.f32 %v1035_v44, %v336_v14  ;;  %v758_v63 = vadd.f32 %v1089_v49, %v426_v33  ;;  %v809_v56 = vmax.f32 %v683_v62, 0.0  ;;  %v827_v2 = vmax.f32 %v755_v48, 0.0  ;;  %v1733_v62 = vpop.permute.xlu0 %380 }
 0x194   :  { %v810_v5 = vmax.f32 %v686_v60, 0.0  ;;  %v828_v6 = vmax.f32 %v758_v63, 0.0  ;;  %v1036_v7 = vpop.f32.mrb[4].mxu0  ;;  %v1090_v8 = vpop.f32.mrb[4].mxu1 }
 0x195   :  { %v1037_v9 = vpop.f32.mrb[5].mxu0  ;;  %v1091_v57 = vpop.f32.mrb[5].mxu1 }
 0x196   :  { %v1717_v58 = vpack.c.bf16 %v810_v5, %v809_v56  ;;  %v1038_v10 = vadd.f32 %v1037_v9, %v1036_v7  ;;  %v1092_v11 = vadd.f32 %v1091_v57, %v1090_v8  ;;  %v1039_v59 = vpop.f32.mrb[6].mxu0  ;;  %v1093_v12 = vpop.f32.mrb[6].mxu1  ;;  %v1719_v15 = vpack.c.bf16 %v828_v6, %v827_v2 }
 0x197   :  { %v1040_v16 = vpop.f32.mrb[7].mxu0  ;;  %v1094_v17 = vpop.f32.mrb[7].mxu1 }
 0x198   :  { %v691_v18 = vadd.f32 %v1038_v10, %v341_v34  ;;  %v763_v19 = vadd.f32 %v1092_v11, %v431_v38  ;;  %v1041_v3 = vadd.f32 %v1040_v16, %v1039_v59  ;;  %v1095_v20 = vadd.f32 %v1094_v17, %v1093_v12  ;;  %v386_v17 = vpop.permute.xlu1 %385 }
 0x19a   :  { %v694_v4 = vadd.f32 %v1041_v3, %v346_v35  ;;  %v766_v21 = vadd.f32 %v1095_v20, %v436_v40  ;;  %v811_v24 = vmax.f32 %v691_v18, 0.0  ;;  %v829_v27 = vmax.f32 %v763_v19, 0.0  ;;  %v471_v18 = vpop.permute.xlu0 %470 }
 0x19c   :  { %v812_v28 = vmax.f32 %v694_v4, 0.0  ;;  %v830_v30 = vmax.f32 %v766_v21, 0.0  ;;  %v1042_v13 = vpop.f32.mrb[8].mxu0  ;;  %v1096_v14 = vpop.f32.mrb[8].mxu1 }
 0x19d   :  { %v1043_v55 = vpop.f32.mrb[9].mxu0  ;;  %v1097_v33 = vpop.f32.mrb[9].mxu1 }
 0x19e   :  { %v1725_v39 = vpack.c.bf16 %v812_v28, %v811_v24  ;;  %v1044_v34 = vadd.f32 %v1043_v55, %v1042_v13  ;;  %v1098_v38 = vadd.f32 %v1097_v33, %v1096_v14  ;;  %v1045_v47 = vpop.f32.mrb[10].mxu0  ;;  %v1099_v50 = vpop.f32.mrb[10].mxu1  ;;  %v1727_v35 = vpack.c.bf16 %v830_v30, %v829_v27 }
 0x19f   :  { %v1046_v40 = vpop.f32.mrb[11].mxu0  ;;  %v1100_v29 = vpop.f32.mrb[11].mxu1 }
 0x1a0   :  { %v699_v36 = vadd.f32 %v1044_v34, %v1699_v41  ;;  %v771_v37 = vadd.f32 %v1098_v38, %v1703_v42  ;;  %v1047_v51 = vadd.f32 %v1046_v40, %v1045_v47  ;;  %v1101_v52 = vadd.f32 %v1100_v29, %v1099_v50  ;;  %v476_v29 = vpop.permute.xlu1 %475 }
 0x1a2   :  { %v702_v53 = vadd.f32 %v1047_v51, %v1701_v25  ;;  %v774_v54 = vadd.f32 %v1101_v52, %v1705_v43  ;;  %v813_v48 = vmax.f32 %v699_v36, 0.0  ;;  %v831_v44 = vmax.f32 %v771_v37, 0.0  ;;  %v391_v36 = vpop.permute.xlu0 %390 }
 0x1a4   :  { %v814_v49 = vmax.f32 %v702_v53, 0.0  ;;  %v832_v60 = vmax.f32 %v774_v54, 0.0  ;;  %v1048_v63 = vpop.f32.mrb[12].mxu0  ;;  %v1102_v56 = vpop.f32.mrb[12].mxu1 }
 0x1a5   :  { %v1049_v2 = vpop.f32.mrb[13].mxu0  ;;  %v1103_v5 = vpop.f32.mrb[13].mxu1 }
 0x1a6   :  { %v1735_v41 = vpack.c.bf16 %v814_v49, %v813_v48  ;;  %v1050_v42 = vadd.f32 %v1049_v2, %v1048_v63  ;;  %v1104_v6 = vadd.f32 %v1103_v5, %v1102_v56  ;;  %v1051_v7 = vpop.f32.mrb[14].mxu0  ;;  %v1105_v8 = vpop.f32.mrb[14].mxu1  ;;  %v1737_v25 = vpack.c.bf16 %v832_v60, %v831_v44 }
 0x1a7   :  { %v1052_v43 = vpop.f32.mrb[15].mxu0  ;;  %v1106_v9 = vpop.f32.mrb[15].mxu1 }
 0x1a8   :  { %v707_v57 = vadd.f32 %v1050_v42, %v1707_v26  ;;  %v779_v10 = vadd.f32 %v1104_v6, %v1711_v46  ;;  %v1053_v11 = vadd.f32 %v1052_v43, %v1051_v7  ;;  %v1107_v59 = vadd.f32 %v1106_v9, %v1105_v8  ;;  %v396_v9 = vpop.permute.xlu1 %395 }
 0x1aa   :  { %v710_v12 = vadd.f32 %v1053_v11, %v1709_v45  ;;  %v782_v16 = vadd.f32 %v1107_v59, %v1713_v0  ;;  %v815_v19 = vmax.f32 %v707_v57, 0.0  ;;  %v833_v3 = vmax.f32 %v779_v10, 0.0  ;;  %v481_v57 = vpop.permute.xlu0 %480 }
 0x1ac   :  { %v816_v20 = vmax.f32 %v710_v12, 0.0  ;;  %v834_v4 = vmax.f32 %v782_v16, 0.0  ;;  %v1054_v21 = vpop.f32.mrb[16].mxu0  ;;  %v1108_v24 = vpop.f32.mrb[16].mxu1 }
 0x1ad   :  { %v1055_v27 = vpop.f32.mrb[17].mxu0  ;;  %v1109_v28 = vpop.f32.mrb[17].mxu1 }
 0x1ae   :  { %v1743_v30 = vpack.c.bf16 %v816_v20, %v815_v19  ;;  %v1056_v26 = vadd.f32 %v1055_v27, %v1054_v21  ;;  %v1110_v46 = vadd.f32 %v1109_v28, %v1108_v24  ;;  %v1057_v13 = vpop.f32.mrb[18].mxu0  ;;  %v1111_v14 = vpop.f32.mrb[18].mxu1  ;;  %v1745_v55 = vpack.c.bf16 %v834_v4, %v833_v3 }
 0x1af   :  { %v1058_v45 = vpop.f32.mrb[19].mxu0  ;;  %v1112_v0 = vpop.f32.mrb[19].mxu1 }
 0x1b0   :  { %v715_v33 = vadd.f32 %v1056_v26, %v1715_v1  ;;  %v787_v34 = vadd.f32 %v1110_v46, %v1723_v23  ;;  %v1059_v38 = vadd.f32 %v1058_v45, %v1057_v13  ;;  %v1113_v47 = vadd.f32 %v1112_v0, %v1111_v14  ;;  %v486_v45 = vpop.permute.xlu1 %485 }
 0x1b2   :  { %v718_v50 = vadd.f32 %v1059_v38, %v1721_v22  ;;  %v790_v40 = vadd.f32 %v1113_v47, %v466_v61  ;;  %v817_v37 = vmax.f32 %v715_v33, 0.0  ;;  %v835_v51 = vmax.f32 %v787_v34, 0.0 }
 0x1b4   :  { %v818_v52 = vmax.f32 %v718_v50, 0.0  ;;  %v836_v53 = vmax.f32 %v790_v40, 0.0  ;;  %v1060_v54 = vpop.f32.mrb[20].mxu0  ;;  %v1114_v48 = vpop.f32.mrb[20].mxu1 }
 0x1b5   :  { %v1061_v44 = vpop.f32.mrb[21].mxu0  ;;  %v1115_v49 = vpop.f32.mrb[21].mxu1 }
 0x1b6   :  { %v1750_v60 = vpack.c.bf16 %v818_v52, %v817_v37  ;;  %v1062_v1 = vadd.f32 %v1061_v44, %v1060_v54  ;;  %v1116_v63 = vadd.f32 %v1115_v49, %v1114_v48  ;;  %v1063_v23 = vpop.f32.mrb[22].mxu0  ;;  %v1117_v56 = vpop.f32.mrb[22].mxu1  ;;  %v1752_v2 = vpack.c.bf16 %v836_v53, %v835_v51 }
 0x1b7   :  { %v1064_v22 = vpop.f32.mrb[23].mxu0  ;;  %v1118_v61 = vpop.f32.mrb[23].mxu1 }
 0x1b8   :  { %v723_v5 = vadd.f32 %v1062_v1, %v1733_v62  ;;  %v795_v42 = vadd.f32 %v1116_v63, %v471_v18  ;;  %v1065_v6 = vadd.f32 %v1064_v22, %v1063_v23  ;;  %v1119_v7 = vadd.f32 %v1118_v61, %v1117_v56  ;;  %v401_v54 = vpop.permute.xlu0 %400  ;;  %v406_v49 = vpop.permute.xlu1 %405 }
 0x1ba   :  { %v726_v8 = vadd.f32 %v1065_v6, %v386_v17  ;;  %v798_v43 = vadd.f32 %v1119_v7, %v476_v29  ;;  %v819_v10 = vmax.f32 %v723_v5, 0.0  ;;  %v837_v11 = vmax.f32 %v795_v42, 0.0 }
 0x1bc   :  { %v820_v59 = vmax.f32 %v726_v8, 0.0  ;;  %v838_v12 = vmax.f32 %v798_v43, 0.0  ;;  %v1066_v16 = vpop.f32.mrb[24].mxu0  ;;  %v1120_v19 = vpop.f32.mrb[24].mxu1 }
 0x1bd   :  { %v1067_v3 = vpop.f32.mrb[25].mxu0  ;;  %v1121_v20 = vpop.f32.mrb[25].mxu1 }
 0x1be   :  { %v850_v4 = vpack.c.bf16 %v820_v59, %v819_v10  ;;  %v1068_v21 = vadd.f32 %v1067_v3, %v1066_v16  ;;  %v1122_v24 = vadd.f32 %v1121_v20, %v1120_v19  ;;  %v1069_v27 = vpop.f32.mrb[26].mxu0  ;;  %v1123_v62 = vpop.f32.mrb[26].mxu1  ;;  %v859_v18 = vpack.c.bf16 %v838_v12, %v837_v11 }
 0x1bf   :  { %v1070_v28 = vpop.f32.mrb[27].mxu0  ;;  %v1124_v26 = vpop.f32.mrb[27].mxu1 }
 0x1c0   :  { %v731_v17 = vadd.f32 %v1068_v21, %v391_v36  ;;  %v803_v46 = vadd.f32 %v1122_v24, %v481_v57  ;;  %v1071_v13 = vadd.f32 %v1070_v28, %v1069_v27  ;;  %v1125_v14 = vadd.f32 %v1124_v26, %v1123_v62 }
 0x1c2   :  { %v734_v0 = vadd.f32 %v1071_v13, %v396_v9  ;;  %v806_v33 = vadd.f32 %v1125_v14, %v486_v45  ;;  %v821_v34 = vmax.f32 %v731_v17, 0.0  ;;  %v839_v38 = vmax.f32 %v803_v46, 0.0 }
 0x1c4   :  { %v822_v47 = vmax.f32 %v734_v0, 0.0  ;;  %v840_v50 = vmax.f32 %v806_v33, 0.0  ;;  %v1072_v40 = vpop.f32.mrb[28].mxu0 }
 0x1c5   :  { %v1073_v29 = vpop.f32.mrb[29].mxu0 }
 0x1c6   :  { %v851_v37 = vpack.c.bf16 %v822_v47, %v821_v34  ;;  %v1074_v51 = vadd.f32 %v1073_v29, %v1072_v40  ;;  %v1075_v52 = vpop.f32.mrb[30].mxu0  ;;  %v860_v53 = vpack.c.bf16 %v840_v50, %v839_v38 }
 0x1c7   :  { %v1076_v48 = vpop.f32.mrb[31].mxu0 }
 0x1c8   :  { %v739_v44 = vadd.f32 %v1074_v51, %v401_v54  ;;  %v1077_v36 = vadd.f32 %v1076_v48, %v1075_v52 }
 0x1ca   :  { %v742_v1 = vadd.f32 %v1077_v36, %v406_v49  ;;  %v823_v63 = vmax.f32 %v739_v44, 0.0 }
 0x1cc   :  { %v824_v23 = vmax.f32 %v742_v1, 0.0  ;;  %v1078_v56 = vpop.f32.mrb[32].mxu0 }
 0x1cd   :  { %v1079_v22 = vpop.f32.mrb[33].mxu0 }
 0x1ce   :  { %v852_v61 = vpack.c.bf16 %v824_v23, %v823_v63  ;;  %v1080_v5 = vadd.f32 %v1079_v22, %v1078_v56  ;;  %v1081_v42 = vpop.f32.mrb[34].mxu0 }
 0x1cf   :  { %v1082_v6 = vpop.f32.mrb[35].mxu0 }
 0x1d0   :  { %v747_v7 = vadd.f32 %v1080_v5, %v1692_v31  ;;  %v1083_v8 = vadd.f32 %v1082_v6, %v1081_v42  ;;  %v1224_v31 = vld [vmem:[%s1793_s5] ss:$8 sps:$4 sm:$0xff]  }
 0x1d2   :  { %v750_v43 = vadd.f32 %v1083_v8, %v1694_v32  ;;  %v825_v9 = vmax.f32 %v747_v7, 0.0  ;;  %v1227_v32 = vld [vmem:[%s1793_s5 + $0x14] ss:$8 sps:$4 sm:$0xff]  }
 0x1d4   :  { %v826_v57 = vmax.f32 %v750_v43, 0.0 }
 0x1d6   :  { %v853_v10 = vpack.c.bf16 %v826_v57, %v825_v9 }
 0x1d8   :  { %1126 = vmatprep.subr.bf16.mxu1 %v853_v10 }
 0x1d9   :  { %1127 = vmatpush3.bf16.msra.mxu1 %v1717_v58  ;;  %v1229_v58 = vld [vmem:[%s1793_s5 + $0x10] ss:$8 sps:$4 sm:$0xff]   ;;  %s1255_s5 = smov [#allocation2]  }
 0x1da   :  { %1128 = vmatprep.subr.bf16.mxu1 %v1719_v15  ;;  %s963_s25 = sshll.u32 %s1255_s5, 4  ;;  %s964_s25 = int_to_ptr.vmem [resolvable:$true] %s963_s25 }
 0x1db   :  { %s1230_s26 = scalar_lea.vmem %s964_s25, 512  ;;  %p1235_p1 = scmp.lt.s32.totalorder %s964_s25, %s964_s25 }
 0x1dc   :  { %p1231_p0 = scmp.ne.s32.totalorder %s964_s25, %s1230_s26  ;;  %p1236_p2 = scmp.lt.s32.totalorder %s1230_s26, %s1230_s26 }
 0x1dd   :  { %1129 = vmatpush3.bf16.msra.mxu1 %v1725_v39 }
 0x1de   :  { %1130 = vmatprep.subr.bf16.mxu1 %v1727_v35  ;;  %p1237_p3 = por %p1236_p2, %p1235_p1 }
 0x1e0   :  { %p1238_p4 = pnand %p1237_p3, %p1231_p0 }
 0x1e1   :  { %1131 = vmatpush3.bf16.msra.mxu1 %v1735_v41 }
 0x1e2   :  { %1132 = vmatprep.subr.bf16.mxu1 %v1737_v25  ;;  %v868_v25 = vpop.permute.xlu0 %867 }
 0x1e5   :  { %1133 = vmatpush3.bf16.msra.mxu1 %v1743_v30 }
 0x1e6   :  { %1134 = vmatprep.subr.bf16.mxu1 %v1745_v55  ;;  %v878_v3 = vpop.permute.xlu0 %877 }
 0x1e9   :  { %1135 = vmatpush3.bf16.msra.mxu1 %v1750_v60 }
 0x1ea   :  { %1136 = vmatprep.subr.bf16.mxu1 %v1752_v2  ;;  %v873_v2 = vpop.permute.xlu1 %872 }
 0x1ed   :  { %1137 = vmatpush3.bf16.msra.mxu1 %v850_v4 }
 0x1ee   :  { %1138 = vmatprep.subr.bf16.mxu1 %v859_v18  ;;  %v883_v24 = vpop.permute.xlu1 %882 }
 0x1f1   :  { %1139 = vmatpush3.bf16.msra.mxu1 %v851_v37 }
 0x1f2   :  { %1140 = vmatprep.subr.bf16.mxu1 %v860_v53 }
 0x1f5   :  { %1141 = vmatpush3.bf16.msra.mxu1 %v852_v61 }
 0x1f8   :  { %938 = vmatmul.mubr.bf16.vlgmr.msra.gmra.mrb[28].mxu1 %v1224_v31 }
 0x1f9   :  { %945 = vmatprep.mubr.bf16.mxu1 %v1227_v32 }
 0x200   :  { %946 = vmatmul.mubr.bf16.gmra.mrb[32].mxu1 %v1229_v58 }
 0x2cb   :  { %v1142_v15 = vpop.f32.mrb[28].mxu1 }
 0x2cc   :  { %v1143_v39 = vpop.f32.mrb[29].mxu1 }
 0x2cd   :  { %v1144_v35 = vadd.f32 %v1143_v39, %v1142_v15  ;;  %v1145_v41 = vpop.f32.mrb[30].mxu1 }
 0x2ce   :  { %v1146_v30 = vpop.f32.mrb[31].mxu1 }
 0x2cf   :  { %v940_v55 = vadd.f32 %v1144_v35, %v868_v25  ;;  %v1147_v60 = vadd.f32 %v1146_v30, %v1145_v41 }
 0x2d1   :  { %954 = vst [vmem:[#allocation2] sm:$0xff] %v940_v55  ;;  %v943_v11 = vadd.f32 %v1147_v60, %v873_v2 }
 0x2d3   :  { %955 = vst [vmem:[#allocation2 + $0x8] sm:$0xff] %v943_v11  ;;  %v1148_v59 = vpop.f32.mrb[32].mxu1 }
 0x2d4   :  { %v1149_v12 = vpop.f32.mrb[33].mxu1 }
 0x2d5   :  { %v1150_v16 = vadd.f32 %v1149_v12, %v1148_v59  ;;  %v1151_v19 = vpop.f32.mrb[34].mxu1 }
 0x2d6   :  { %v1152_v20 = vpop.f32.mrb[35].mxu1 }
 0x2d7   :  { %v948_v4 = vadd.f32 %v1150_v16, %v878_v3  ;;  %v1153_v21 = vadd.f32 %v1152_v20, %v1151_v19 }
 0x2d9   :  { %956 = vst [vmem:[#allocation2 + $0x10] sm:$0xff] %v948_v4  ;;  %v951_v27 = vadd.f32 %v1153_v21, %v883_v24 }
 0x2db   :  { %957 = vst [vmem:[#allocation2 + $0x18] sm:$0xff] %v951_v27 }
 0x2dc   :  { %1241 = shalt.err (!%p1238_p4)
}
 0x2dd   :  { %s1242_s29 = scalar_lea.hbm %s1795_s7, 512 }
 0x2de   :  { %p1243_p5 = scmp.ne.s32.totalorder %s1795_s7, %s1242_s29  ;;  %p1246_p6 = scmp.lt.u32.totalorder %s1242_s29, %s1795_s7 }
 0x2e0   :  { %p1248_p7 = pnand %p1246_p6, %p1243_p5 }
 0x2e2   :  { %1251 = shalt.err (!%p1248_p7)
}
 0x2e3   :  { %s1256_s4 = smov 128   ;;  %s1257_s11 = smov 8  }
 0x2e4   :  { %969 = dma.vmem_to_hbm [thread:$0]  %s964_s25, 512, %s1795_s7, [#allocation3], %s1256_s4, %s1256_s4, %s1257_s11  }
 0x2e5   :  { %1252 = dma.done.wait [#allocation3], 512  }
 0x2e6   :  { %1253 = vsyncadd [#allocation3], 4294966784 }
 0x2e7   :  { %973 = vsyncpa [#allocation3], 1 }

</bundles_post_ra>
